<compile_context>
chip_gen: v7x
topology: tpu7x:2x2x1
jax: 0.10.0
libtpu: 0.0.40
codegen_flags: <defaults>
</compile_context>

<pallas_src>
import jax
import jax.numpy as jnp
from jax import lax
from jax.experimental import pallas as pl
from jax.experimental.pallas import tpu as pltpu


LANE = 128
SUBLANE = 8


def _round_up(n, m):
    return ((n + m - 1) // m) * m


def mlp_kernel(x_ref, w1_ref, b1_ref, w2_ref, b2_ref,
               w3_ref, b3_ref, w4t_ref, b4t_ref, o_ref):
    """Fused 4-layer MLP for one batch tile, fully VMEM-resident.

    Matmul operands are bf16 (native MXU passes), accumulation and
    bias/ReLU are f32.  The final layer is computed transposed so the
    output block is (action_pad, tb) with batch on the lane axis.
    """
    x = x_ref[...].astype(jnp.bfloat16)
    h = jnp.dot(x, w1_ref[...], preferred_element_type=jnp.float32) + b1_ref[...]
    h = jnp.maximum(h, 0.0).astype(jnp.bfloat16)
    h = jnp.dot(h, w2_ref[...], preferred_element_type=jnp.float32) + b2_ref[...]
    h = jnp.maximum(h, 0.0).astype(jnp.bfloat16)
    h = jnp.dot(h, w3_ref[...], preferred_element_type=jnp.float32) + b3_ref[...]
    h = jnp.maximum(h, 0.0).astype(jnp.bfloat16)
    # (action_pad, d_h) x (tb, d_h) contracted on d_h -> (action_pad, tb)
    out = lax.dot_general(w4t_ref[...], h, (((1,), (1,)), ((), ())),
                          preferred_element_type=jnp.float32) + b4t_ref[...]
    o_ref[...] = out.astype(o_ref.dtype)


def prepare_policy_params(params):
    """One-time padding + bf16 cast of the parameters (hoisted out of the
    per-call path).  Weights become MXU/lane-shaped bf16; biases stay f32.
    Zero-padding is exact so the valid region of the output is untouched."""
    num_inputs = params["w1"].shape[0]
    num_hiddens = params["w1"].shape[1]
    num_outputs = params["w4"].shape[1]
    d_h = _round_up(num_hiddens, LANE)       # hidden dim on the lane axis
    d_out = _round_up(num_outputs, SUBLANE)  # action dim only needs sublane pad

    def padc(a, rows, cols, dtype):
        a = jnp.asarray(a, jnp.float32)
        a = jnp.pad(a, ((0, rows - a.shape[0]), (0, cols - a.shape[1])))
        return a.astype(dtype)

    return {
        "w1": padc(params["w1"], num_inputs, d_h, jnp.bfloat16),
        "b1": padc(params["b1"], 1, d_h, jnp.float32),
        "w2": padc(params["w2"], d_h, d_h, jnp.bfloat16),
        "b2": padc(params["b2"], 1, d_h, jnp.float32),
        "w3": padc(params["w3"], d_h, d_h, jnp.bfloat16),
        "b3": padc(params["b3"], 1, d_h, jnp.float32),
        # Last layer stored pre-transposed: (action, hidden) padded to (8, 128).
        "w4t": padc(params["w4"].T, d_out, d_h, jnp.bfloat16),
        "b4t": padc(params["b4"].T, d_out, 1, jnp.float32),
        "dims": (int(num_inputs), int(num_hiddens), int(num_outputs)),
    }


def policy_nn_forward(x, prep, *, batch_tile=2048):
    """x: (B, state_size) f32.  prep: output of prepare_policy_params."""
    B, num_inputs = x.shape
    n_in, _, n_out = prep["dims"]
    assert num_inputs == n_in, "state_size mismatch with prepared params"
    d_h = prep["w1"].shape[1]
    d_out = prep["w4t"].shape[0]

    x = x.astype(jnp.float32)

    # Batch tile selection:
    #  * small B: one block of round_up(B, 8) rows (single grid step).
    #  * B > 256: tile is a multiple of 128, capped at batch_tile, and chosen
    #    so the grid has >= 2 steps -> the "parallel" batch axis can be
    #    sharded across v7x's two TensorCores.
    if B <= 256:
        tb = _round_up(B, SUBLANE)
    else:
        tb = min(_round_up(batch_tile, LANE), _round_up((B + 1) // 2, LANE))
    b_pad = _round_up(B, tb)
    grid = (b_pad // tb,)

    # Parameters: full-array blocks, constant index maps -> VMEM-resident
    # across batch grid steps (no re-DMA).
    def rep(shape):
        return pl.BlockSpec(shape, lambda i: (0, 0))

    in_specs = [
        # x batch tile; a ragged final block is clipped by Pallas (OOB reads
        # only feed output columns >= B, which are sliced away below).
        pl.BlockSpec((tb, num_inputs), lambda i: (i, 0)),
        rep((num_inputs, d_h)), rep((1, d_h)),   # layer 1
        rep((d_h, d_h)), rep((1, d_h)),          # layer 2
        rep((d_h, d_h)), rep((1, d_h)),          # layer 3
        rep((d_out, d_h)), rep((d_out, 1)),      # layer 4 (transposed)
    ]
    # Output laid out (action_pad, batch): lane-dense stores, ~16x less
    # writeback than a (batch, 128) f32 slab.
    out_spec = pl.BlockSpec((d_out, tb), lambda i: (0, i))

    out_t = pl.pallas_call(
        mlp_kernel,
        out_shape=jax.ShapeDtypeStruct((d_out, b_pad), jnp.float32),
        grid=grid,
        in_specs=in_specs,
        out_specs=out_spec,
        compiler_params=pltpu.CompilerParams(
            dimension_semantics=("parallel",)),
    )(x, prep["w1"], prep["b1"], prep["w2"], prep["b2"],
      prep["w3"], prep["b3"], prep["w4t"], prep["b4t"])

    # (action_pad, b_pad) -> (B, action_size); tiny wrapper slice + transpose.
    return out_t[:n_out, :B].T


def init_policy_params(key, num_inputs, num_outputs, num_hiddens=32):
    """Deterministic init mimicking PyTorch Linear's U(-1/sqrt(fan_in), +)."""
    dims = [(num_inputs, num_hiddens),
            (num_hiddens, num_hiddens),
            (num_hiddens, num_hiddens),
            (num_hiddens, num_outputs)]
    params = {}
    for idx, (fan_in, fan_out) in enumerate(dims, start=1):
        key, kw, kb = jax.random.split(key, 3)
        bound = 1.0 / jnp.sqrt(jnp.float32(fan_in))
        params[f"w{idx}"] = jax.random.uniform(
            kw, (fan_in, fan_out), jnp.float32, -bound, bound)
        params[f"b{idx}"] = jax.random.uniform(
            kb, (1, fan_out), jnp.float32, -bound, bound)
    return params


def policy_nn_ref(x, params):
    """Pure-JAX f32 reference for correctness checking."""
    h = jnp.maximum(x @ params["w1"] + params["b1"], 0.0)
    h = jnp.maximum(h @ params["w2"] + params["b2"], 0.0)
    h = jnp.maximum(h @ params["w3"] + params["b3"], 0.0)
    return h @ params["w4"] + params["b4"]


if __name__ == "__main__":
    # Small synthetic "system": state_size=4, action_size=2, hidden=32, batch=8.
    STATE_SIZE, ACTION_SIZE, HIDDEN, BATCH = 4, 2, 32, 8

    key = jax.random.PRNGKey(0)
    key, kx = jax.random.split(key)
    x = jax.random.normal(kx, (BATCH, STATE_SIZE), jnp.float32)
    params = init_policy_params(key, STATE_SIZE, ACTION_SIZE, HIDDEN)
    prep = prepare_policy_params(params)   # one-time pad + bf16 cast (hoisted)

    # bf16 MXU operands -> looser tolerance than the pure-f32 version.
    ATOL = RTOL = 5e-2

    out = jax.block_until_ready(policy_nn_forward(x, prep))
    ref = policy_nn_ref(x, params)
    assert out.shape == (BATCH, ACTION_SIZE)
    assert jnp.allclose(out, ref, atol=ATOL, rtol=RTOL), "mismatch vs reference"

    # Odd batch (5 rows): exercises the clipped partial last input block.
    key, kx2 = jax.random.split(key)
    x_odd = jax.random.normal(kx2, (5, STATE_SIZE), jnp.float32)
    out_odd = jax.block_until_ready(policy_nn_forward(x_odd, prep))
    ref_odd = policy_nn_ref(x_odd, params)
    assert out_odd.shape == (5, ACTION_SIZE)
    assert jnp.allclose(out_odd, ref_odd, atol=ATOL, rtol=RTOL), "odd-batch mismatch"

    # Mid-size batch (300 rows): >= 2 grid steps on the "parallel" batch axis
    # (v7x megacore path) plus a ragged final block.
    key, kx3 = jax.random.split(key)
    x_big = jax.random.normal(kx3, (300, STATE_SIZE), jnp.float32)
    out_big = jax.block_until_ready(policy_nn_forward(x_big, prep))
    ref_big = policy_nn_ref(x_big, params)
    assert out_big.shape == (300, ACTION_SIZE)
    assert jnp.allclose(out_big, ref_big, atol=ATOL, rtol=RTOL), "big-batch mismatch"

    print("KERNEL_OK")
</pallas_src>

<mosaic_0001>
module attributes {stable_mosaic.version = 11 : i64} {
  func.func @mlp_kernel(%arg0: i32, %arg1: memref<8x4xf32, #tpu.memory_space<vmem>>, %arg2: memref<4x128xbf16, #tpu.memory_space<vmem>>, %arg3: memref<1x128xf32, #tpu.memory_space<vmem>>, %arg4: memref<128x128xbf16, #tpu.memory_space<vmem>>, %arg5: memref<1x128xf32, #tpu.memory_space<vmem>>, %arg6: memref<128x128xbf16, #tpu.memory_space<vmem>>, %arg7: memref<1x128xf32, #tpu.memory_space<vmem>>, %arg8: memref<8x128xbf16, #tpu.memory_space<vmem>>, %arg9: memref<8x1xf32, #tpu.memory_space<vmem>>, %arg10: memref<8x8xf32, #tpu.memory_space<vmem>>) attributes {dimension_semantics = [#tpu.dimension_semantics<parallel>], iteration_bounds = array<i64: 1>, scalar_prefetch = 0 : i64, scratch_operands = 0 : i64, tpu.core_type = #tpu.core_type<tc>, window_params = [{transform_indices = @transform_0, window_bounds = array<i64: 8, 4>}, {pipeline_mode = #tpu.pipeline_mode<synchronous>, transform_indices = @transform_1, window_bounds = array<i64: 4, 128>}, {pipeline_mode = #tpu.pipeline_mode<synchronous>, transform_indices = @transform_2, window_bounds = array<i64: 1, 128>}, {pipeline_mode = #tpu.pipeline_mode<synchronous>, transform_indices = @transform_3, window_bounds = array<i64: 128, 128>}, {pipeline_mode = #tpu.pipeline_mode<synchronous>, transform_indices = @transform_4, window_bounds = array<i64: 1, 128>}, {pipeline_mode = #tpu.pipeline_mode<synchronous>, transform_indices = @transform_5, window_bounds = array<i64: 128, 128>}, {pipeline_mode = #tpu.pipeline_mode<synchronous>, transform_indices = @transform_6, window_bounds = array<i64: 1, 128>}, {pipeline_mode = #tpu.pipeline_mode<synchronous>, transform_indices = @transform_7, window_bounds = array<i64: 8, 128>}, {pipeline_mode = #tpu.pipeline_mode<synchronous>, transform_indices = @transform_8, window_bounds = array<i64: 8, 1>}, {transform_indices = @transform_9, window_bounds = array<i64: 8, 8>}]} {
    %c0 = arith.constant 0 : index
    %c0_0 = arith.constant 0 : index
    %0 = vector.load %arg1[%c0, %c0_0] : memref<8x4xf32, #tpu.memory_space<vmem>>, vector<8x4xf32>
    %1 = arith.truncf %0 : vector<8x4xf32> to vector<8x4xbf16>
    %c0_1 = arith.constant 0 : index
    %c0_2 = arith.constant 0 : index
    %2 = vector.load %arg2[%c0_1, %c0_2] : memref<4x128xbf16, #tpu.memory_space<vmem>>, vector<4x128xbf16>
    %cst = arith.constant dense<0.000000e+00> : vector<8x128xf32>
    %3 = tpu.matmul %1, %2, %cst {dimension_numbers = #tpu.dot_dimension_numbers<[1], [0], [0], [1], [0, 0, 1, 1], [], []>} : vector<8x4xbf16>, vector<4x128xbf16>, vector<8x128xf32> -> vector<8x128xf32>
    %c0_3 = arith.constant 0 : index
    %c0_4 = arith.constant 0 : index
    %4 = vector.load %arg3[%c0_3, %c0_4] : memref<1x128xf32, #tpu.memory_space<vmem>>, vector<1x128xf32>
    %5 = vector.broadcast %4 : vector<1x128xf32> to vector<8x128xf32>
    %6 = arith.addf %3, %5 : vector<8x128xf32>
    %cst_5 = arith.constant 0.000000e+00 : f32
    %7 = vector.broadcast %cst_5 : f32 to vector<8x128xf32>
    %8 = arith.maximumf %6, %7 : vector<8x128xf32>
    %9 = arith.truncf %8 : vector<8x128xf32> to vector<8x128xbf16>
    %c0_6 = arith.constant 0 : index
    %c0_7 = arith.constant 0 : index
    %10 = vector.load %arg4[%c0_6, %c0_7] : memref<128x128xbf16, #tpu.memory_space<vmem>>, vector<128x128xbf16>
    %cst_8 = arith.constant dense<0.000000e+00> : vector<8x128xf32>
    %11 = tpu.matmul %9, %10, %cst_8 {dimension_numbers = #tpu.dot_dimension_numbers<[1], [0], [0], [1], [0, 0, 1, 1], [], []>} : vector<8x128xbf16>, vector<128x128xbf16>, vector<8x128xf32> -> vector<8x128xf32>
    %c0_9 = arith.constant 0 : index
    %c0_10 = arith.constant 0 : index
    %12 = vector.load %arg5[%c0_9, %c0_10] : memref<1x128xf32, #tpu.memory_space<vmem>>, vector<1x128xf32>
    %13 = vector.broadcast %12 : vector<1x128xf32> to vector<8x128xf32>
    %14 = arith.addf %11, %13 : vector<8x128xf32>
    %cst_11 = arith.constant 0.000000e+00 : f32
    %15 = vector.broadcast %cst_11 : f32 to vector<8x128xf32>
    %16 = arith.maximumf %14, %15 : vector<8x128xf32>
    %17 = arith.truncf %16 : vector<8x128xf32> to vector<8x128xbf16>
    %c0_12 = arith.constant 0 : index
    %c0_13 = arith.constant 0 : index
    %18 = vector.load %arg6[%c0_12, %c0_13] : memref<128x128xbf16, #tpu.memory_space<vmem>>, vector<128x128xbf16>
    %cst_14 = arith.constant dense<0.000000e+00> : vector<8x128xf32>
    %19 = tpu.matmul %17, %18, %cst_14 {dimension_numbers = #tpu.dot_dimension_numbers<[1], [0], [0], [1], [0, 0, 1, 1], [], []>} : vector<8x128xbf16>, vector<128x128xbf16>, vector<8x128xf32> -> vector<8x128xf32>
    %c0_15 = arith.constant 0 : index
    %c0_16 = arith.constant 0 : index
    %20 = vector.load %arg7[%c0_15, %c0_16] : memref<1x128xf32, #tpu.memory_space<vmem>>, vector<1x128xf32>
    %21 = vector.broadcast %20 : vector<1x128xf32> to vector<8x128xf32>
    %22 = arith.addf %19, %21 : vector<8x128xf32>
    %cst_17 = arith.constant 0.000000e+00 : f32
    %23 = vector.broadcast %cst_17 : f32 to vector<8x128xf32>
    %24 = arith.maximumf %22, %23 : vector<8x128xf32>
    %25 = arith.truncf %24 : vector<8x128xf32> to vector<8x128xbf16>
    %c0_18 = arith.constant 0 : index
    %c0_19 = arith.constant 0 : index
    %26 = vector.load %arg8[%c0_18, %c0_19] : memref<8x128xbf16, #tpu.memory_space<vmem>>, vector<8x128xbf16>
    %cst_20 = arith.constant dense<0.000000e+00> : vector<8x8xf32>
    %27 = tpu.matmul %26, %25, %cst_20 {dimension_numbers = #tpu.dot_dimension_numbers<[1], [1], [0], [0], [0, 0, 1, 0], [], []>} : vector<8x128xbf16>, vector<8x128xbf16>, vector<8x8xf32> -> vector<8x8xf32>
    %c0_21 = arith.constant 0 : index
    %c0_22 = arith.constant 0 : index
    %28 = vector.load %arg9[%c0_21, %c0_22] : memref<8x1xf32, #tpu.memory_space<vmem>>, vector<8x1xf32>
    %29 = vector.broadcast %28 : vector<8x1xf32> to vector<8x8xf32>
    %30 = arith.addf %27, %29 : vector<8x8xf32>
    %c0_23 = arith.constant 0 : index
    %c0_24 = arith.constant 0 : index
    %31 = vector.load %arg10[%c0_23, %c0_24] : memref<8x8xf32, #tpu.memory_space<vmem>>, vector<8x8xf32>
    tpu.vector_store %arg10[%c0_23, %c0_24], %30 {strides = array<i32>} : memref<8x8xf32, #tpu.memory_space<vmem>>, vector<8x8xf32>,
    return
  }
  func.func @transform_0(%arg0: i32) -> (i32, i32) {
    %c0_i32 = arith.constant 0 : i32
    %c0_i32_0 = arith.constant 0 : i32
    return %arg0, %c0_i32 : i32, i32
  }
  func.func @transform_1(%arg0: i32) -> (i32, i32) {
    %c0_i32 = arith.constant 0 : i32
    %c0_i32_0 = arith.constant 0 : i32
    %c0_i32_1 = arith.constant 0 : i32
    return %c0_i32, %c0_i32_0 : i32, i32
  }
  func.func @transform_2(%arg0: i32) -> (i32, i32) {
    %c0_i32 = arith.constant 0 : i32
    %c0_i32_0 = arith.constant 0 : i32
    %c0_i32_1 = arith.constant 0 : i32
    return %c0_i32, %c0_i32_0 : i32, i32
  }
  func.func @transform_3(%arg0: i32) -> (i32, i32) {
    %c0_i32 = arith.constant 0 : i32
    %c0_i32_0 = arith.constant 0 : i32
    %c0_i32_1 = arith.constant 0 : i32
    return %c0_i32, %c0_i32_0 : i32, i32
  }
  func.func @transform_4(%arg0: i32) -> (i32, i32) {
    %c0_i32 = arith.constant 0 : i32
    %c0_i32_0 = arith.constant 0 : i32
    %c0_i32_1 = arith.constant 0 : i32
    return %c0_i32, %c0_i32_0 : i32, i32
  }
  func.func @transform_5(%arg0: i32) -> (i32, i32) {
    %c0_i32 = arith.constant 0 : i32
    %c0_i32_0 = arith.constant 0 : i32
    %c0_i32_1 = arith.constant 0 : i32
    return %c0_i32, %c0_i32_0 : i32, i32
  }
  func.func @transform_6(%arg0: i32) -> (i32, i32) {
    %c0_i32 = arith.constant 0 : i32
    %c0_i32_0 = arith.constant 0 : i32
    %c0_i32_1 = arith.constant 0 : i32
    return %c0_i32, %c0_i32_0 : i32, i32
  }
  func.func @transform_7(%arg0: i32) -> (i32, i32) {
    %c0_i32 = arith.constant 0 : i32
    %c0_i32_0 = arith.constant 0 : i32
    %c0_i32_1 = arith.constant 0 : i32
    return %c0_i32, %c0_i32_0 : i32, i32
  }
  func.func @transform_8(%arg0: i32) -> (i32, i32) {
    %c0_i32 = arith.constant 0 : i32
    %c0_i32_0 = arith.constant 0 : i32
    %c0_i32_1 = arith.constant 0 : i32
    return %c0_i32, %c0_i32_0 : i32, i32
  }
  func.func @transform_9(%arg0: i32) -> (i32, i32) {
    %c0_i32 = arith.constant 0 : i32
    %c0_i32_0 = arith.constant 0 : i32
    return %c0_i32, %arg0 : i32, i32
  }
}

</mosaic_0001>

<bundles_post_ra>
// kernel: tpu_custom_call.1
= control target key start
LH: loop header
LB: loop body
LE: loop exit
PB: predicated region body
PF: predicated region fallthrough
CT: control target
= control target key end

     0   :  { %14 = vsyncpa [#allocation3], 0  ;;  %s745_s0 = inlined_call_operand.vmem [shape: f32[8,4], index: 0, kind: input, shape index: {}]   ;;  %s746_s1 = inlined_call_operand.vmem [shape: bf16[4,128], index: 1, kind: input, shape index: {}]   ;;  %s747_s2 = inlined_call_operand.vmem [shape: f32[1,128], index: 2, kind: input, shape index: {}]   ;;  %s748_s3 = inlined_call_operand.hbm [shape: bf16[128,128], index: 3, kind: input, shape index: {}]   ;;  %s749_s4 = inlined_call_operand.vmem [shape: f32[1,128], index: 4, kind: input, shape index: {}]   ;;  %s750_s5 = inlined_call_operand.hbm [shape: bf16[128,128], index: 5, kind: input, shape index: {}]   ;;  %s751_s6 = inlined_call_operand.vmem [shape: f32[1,128], index: 6, kind: input, shape index: {}]   ;;  %s752_s7 = inlined_call_operand.vmem [shape: bf16[8,128], index: 7, kind: input, shape index: {}]   ;;  %s753_s8 = inlined_call_operand.vmem [shape: f32[8,1], index: 8, kind: input, shape index: {}]   ;;  %s754_s9 = inlined_call_operand.hbm [shape: f32[8,8], index: 9, kind: output, shape index: {}]  }
   0x1   :  { %15 = vsyncpa [#allocation6], 0 }
   0x2   :  { %16 = vsyncpa [#allocation4], 0  ;;  %s604_s30 = smov [#allocation2]   ;;  %s532_s13 = scalar_lea.hbm %s748_s3, 1024 }
   0x3   :  { %s28_s10 = sshll.u32 %s604_s30, 4  ;;  %p533_p0 = scmp.ne.s32.totalorder %s748_s3, %s532_s13  ;;  %s29_s10 = int_to_ptr.vmem [resolvable:$true] %s28_s10 }
   0x4   :  { %p536_p1 = scmp.lt.u32.totalorder %s532_s13, %s748_s3 }
   0x6   :  { %p538_p2 = pnand %p536_p1, %p533_p0 }
   0x8   :  { %541 = shalt.err (!%p538_p2)
}
   0x9   :  { %s542_s18 = scalar_lea.vmem %s29_s10, 1024  ;;  %p547_p4 = scmp.lt.s32.totalorder %s29_s10, %s29_s10 }
   0xa   :  { %p543_p3 = scmp.ne.s32.totalorder %s29_s10, %s542_s18  ;;  %p548_p5 = scmp.lt.s32.totalorder %s542_s18, %s542_s18 }
   0xc   :  { %p549_p6 = por %p548_p5, %p547_p4 }
   0xe   :  { %p550_p7 = pnand %p549_p6, %p543_p3 }
  0x10   :  { %553 = shalt.err (!%p550_p7)
}
  0x11   :  { %s605_s19 = smov 64   ;;  %s606_s20 = smov 4  }
  0x12   :  { %34 = dma.hbm_to_vmem [thread:$0]  %s748_s3, 1024, %s29_s10, [#allocation3], %s605_s19, %s605_s19, %s606_s20  }
  0x13   :  { %s607_s23 = smov [#allocation5]   ;;  %s554_s27 = scalar_lea.hbm %s750_s5, 1024 }
  0x14   :  { %s42_s24 = sshll.u32 %s607_s23, 4  ;;  %p555_p8 = scmp.ne.s32.totalorder %s750_s5, %s554_s27  ;;  %s43_s24 = int_to_ptr.vmem [resolvable:$true] %s42_s24 }
  0x15   :  { %p558_p9 = scmp.lt.u32.totalorder %s554_s27, %s750_s5 }
  0x17   :  { %p560_p10 = pnand %p558_p9, %p555_p8 }
  0x19   :  { %563 = shalt.err (!%p560_p10)
}
  0x1a   :  { %s564_s12 = scalar_lea.vmem %s43_s24, 1024  ;;  %p569_p12 = scmp.lt.s32.totalorder %s43_s24, %s43_s24 }
  0x1b   :  { %p565_p11 = scmp.ne.s32.totalorder %s43_s24, %s564_s12  ;;  %p570_p13 = scmp.lt.s32.totalorder %s564_s12, %s564_s12 }
  0x1d   :  { %p571_p0 = por %p570_p13, %p569_p12 }
  0x1f   :  { %p572_p1 = pnand %p571_p0, %p565_p11 }
  0x21   :  { %575 = shalt.err (!%p572_p1)
}
  0x22   :  { %48 = dma.hbm_to_vmem [thread:$0]  %s750_s5, 1024, %s43_s24, [#allocation6], %s605_s19, %s605_s19, %s606_s20  }
  0x23   :  { %598 = dma.done.wait [#allocation3], 1024  }
  0x24   :  { %599 = vsyncadd [#allocation3], 4294966272 }
  0x25   :  { %600 = dma.done.wait [#allocation6], 1024  }
  0x26   :  { %601 = vsyncadd [#allocation6], 4294966272  ;;  %v608_v0 = vmov 0.0   ;;  %vm609_vm0 = vmmov 0   ;;  %vm76_vm1 = vcmask 1041408   ;;  %v62_v2 = vld [vmem:[%s745_s0] sm:$0xff] }
  0x27   :  { %455 = vmatprep.subr.bf16.mxu0 %v608_v0  ;;  %457 = vmatprep.mubr.msk.bf16.mxu0 %vm609_vm0, %v608_v0  ;;  %v64_v1 = vld [vmem:[%s746_s1] sm:$0x3]  ;;  %v63_v4 = vpack.c.bf16 %v62_v2, %v62_v2  ;;  %vm72_vm2 = vcmask 31744   ;;  %v517_v6 = vld [vmem:[#allocation2 + $0x8] sm:$0xff]   ;;  %v518_v7 = vld [vmem:[#allocation2 + $0x10] sm:$0xff]   ;;  %v610_v38 = vmov 0  }
  0x28   :  { %461 = vmatprep.subr.bf16.mxu1 %v608_v0  ;;  %477 = vmatprep.mubr.msk.bf16.mxu1 %vm609_vm0, %v608_v0  ;;  %v78_v3 = vsel %vm76_vm1, %v64_v1, 0  ;;  %v516_v5 = vld [vmem:[#allocation2] sm:$0xff]   ;;  %v519_v8 = vld [vmem:[#allocation2 + $0x18] sm:$0xff]   ;;  %v521_v10 = vld [vmem:[#allocation2 + $0x28] sm:$0xff]   ;;  %vm395_vm3 = vcmask 64512  }
  0x29   :  { %456 = vmatpush3.bf16.msra.mxu0 %v78_v3  ;;  %462 = vmatpush3.bf16.msra.mxu1 %v516_v5  ;;  %v520_v9 = vld [vmem:[#allocation2 + $0x20] sm:$0xff]   ;;  %v522_v11 = vld [vmem:[#allocation2 + $0x30] sm:$0xff]   ;;  %v523_v12 = vld [vmem:[#allocation2 + $0x38] sm:$0xff]  }
  0x2a   :  { %481 = vmatprep.subr.bf16.mxu0 %v608_v0  ;;  %463 = vmatprep.subr.bf16.mxu1 %v608_v0  ;;  %v524_v13 = vld [vmem:[#allocation5] sm:$0xff]   ;;  %v525_v14 = vld [vmem:[#allocation5 + $0x8] sm:$0xff]   ;;  %v526_v15 = vld [vmem:[#allocation5 + $0x10] sm:$0xff]  }
  0x2b   :  { %v527_v16 = vld [vmem:[#allocation5 + $0x18] sm:$0xff]   ;;  %v528_v17 = vld [vmem:[#allocation5 + $0x20] sm:$0xff]   ;;  %v529_v18 = vld [vmem:[#allocation5 + $0x28] sm:$0xff]   ;;  %515 = vset.pattern.permute.xlu0 %v610_v38 }
  0x2c   :  { %458 = vmatmul.mubr.msk.bf16.vlgmr.msra.gmra.mrb[0].mxu0 %vm72_vm2, %v63_v4  ;;  %v413_v19 = vld [vmem:[%s747_s2] ss:$0 sm:$0xff]  ;;  %v530_v27 = vld [vmem:[#allocation5 + $0x30] sm:$0xff]   ;;  %v531_v28 = vld [vmem:[#allocation5 + $0x38] sm:$0xff]  }
  0x2d   :  { %497 = vmatprep.mubr.msk.bf16.mxu0 %vm609_vm0, %v608_v0  ;;  %464 = vmatpush3.bf16.msra.mxu1 %v517_v6  ;;  %v415_v29 = vld [vmem:[%s749_s4] ss:$0 sm:$0xff] }
  0x2e   :  { %465 = vmatprep.subr.bf16.mxu1 %v608_v0  ;;  %482 = vmatpush3.bf16.msra.mxu0 %v524_v13  ;;  %v349_v37 = vld [vmem:[%s753_s8] sm:$0xff]  ;;  %s611_s8 = smov [#allocation7]  }
  0x2f   :  { %483 = vmatprep.subr.bf16.mxu0 %v608_v0  ;;  %352 = vperm.xlu0 %515, %v349_v37   ;;  %v424_v39 = vld [vmem:[%s751_s6] ss:$0 sm:$0xff]  ;;  %s403_s22 = sshll.u32 %s611_s8, 4  ;;  %s404_s22 = int_to_ptr.vmem [resolvable:$true] %s403_s22 }
  0x30   :  { %v348_v47 = vld [vmem:[%s752_s7] sm:$0xf]  ;;  %s576_s6 = scalar_lea.vmem %s404_s22, 128  ;;  %p581_p3 = scmp.lt.s32.totalorder %s404_s22, %s404_s22 }
  0x31   :  { %466 = vmatpush3.bf16.msra.mxu1 %v518_v7  ;;  %p577_p2 = scmp.ne.s32.totalorder %s404_s22, %s576_s6  ;;  %p582_p4 = scmp.lt.s32.totalorder %s576_s6, %s576_s6 }
  0x32   :  { %467 = vmatprep.subr.bf16.mxu1 %v608_v0  ;;  %484 = vmatpush3.bf16.msra.mxu0 %v525_v14 }
  0x33   :  { %485 = vmatprep.subr.bf16.mxu0 %v608_v0  ;;  %p583_p5 = por %p582_p4, %p581_p3 }
  0x35   :  { %468 = vmatpush3.bf16.msra.mxu1 %v519_v8  ;;  %p584_p6 = pnand %p583_p5, %p577_p2 }
  0x36   :  { %469 = vmatprep.subr.bf16.mxu1 %v608_v0  ;;  %486 = vmatpush3.bf16.msra.mxu0 %v526_v15 }
  0x37   :  { %487 = vmatprep.subr.bf16.mxu0 %v608_v0 }
  0x39   :  { %470 = vmatpush3.bf16.msra.mxu1 %v520_v9 }
  0x3a   :  { %471 = vmatprep.subr.bf16.mxu1 %v608_v0  ;;  %488 = vmatpush3.bf16.msra.mxu0 %v527_v16 }
  0x3b   :  { %489 = vmatprep.subr.bf16.mxu0 %v608_v0 }
  0x3d   :  { %472 = vmatpush3.bf16.msra.mxu1 %v521_v10 }
  0x3e   :  { %473 = vmatprep.subr.bf16.mxu1 %v608_v0  ;;  %490 = vmatpush3.bf16.msra.mxu0 %v528_v17 }
  0x3f   :  { %491 = vmatprep.subr.bf16.mxu0 %v608_v0 }
  0x41   :  { %474 = vmatpush3.bf16.msra.mxu1 %v522_v11 }
  0x42   :  { %475 = vmatprep.subr.bf16.mxu1 %v608_v0  ;;  %492 = vmatpush3.bf16.msra.mxu0 %v529_v18 }
  0x43   :  { %493 = vmatprep.subr.bf16.mxu0 %v608_v0 }
  0x45   :  { %476 = vmatpush3.bf16.msra.mxu1 %v523_v12 }
  0x46   :  { %501 = vmatprep.subr.bf16.mxu1 %v608_v0  ;;  %494 = vmatpush3.bf16.msra.mxu0 %v530_v27 }
  0x47   :  { %495 = vmatprep.subr.bf16.mxu0 %v608_v0 }
  0x4a   :  { %496 = vmatpush3.bf16.msra.mxu0 %v531_v28 }
  0xae   :  { %v353_v48 = vpop.permute.xlu0 %352 }
  0xff   :  { %v114_v20 = vpop.f32.mrb[0].mxu0 }
 0x100   :  { %v115_v21 = vadd.f32 %v413_v19, %v114_v20  ;;  %v459_v22 = vpop.f32.mrb[1].mxu0 }
 0x101   :  { %v117_v23 = vpop.f32.mrb[2].mxu0 }
 0x102   :  { %v120_v24 = vmax.f32 %v115_v21, 0.0  ;;  %v460_v25 = vpop.f32.mrb[3].mxu0 }
 0x104   :  { %v121_v26 = vpack.c.bf16 %v120_v24, %v120_v24 }
 0x106   :  { %478 = vmatmul.mubr.bf16.vlgmr.msra.gmra.mrb[0].mxu1 %v121_v26 }
 0x107   :  { %503 = vmatprep.mubr.msk.bf16.mxu1 %vm609_vm0, %v608_v0 }
 0x1d9   :  { %v227_v30 = vpop.f32.mrb[0].mxu1 }
 0x1da   :  { %v228_v31 = vadd.f32 %v415_v29, %v227_v30  ;;  %v479_v32 = vpop.f32.mrb[1].mxu1 }
 0x1db   :  { %v230_v33 = vpop.f32.mrb[2].mxu1 }
 0x1dc   :  { %v233_v34 = vmax.f32 %v228_v31, 0.0  ;;  %v480_v35 = vpop.f32.mrb[3].mxu1 }
 0x1de   :  { %v234_v36 = vpack.c.bf16 %v233_v34, %v233_v34 }
 0x1e0   :  { %498 = vmatmul.mubr.bf16.vlgmr.msra.gmra.mrb[4].mxu0 %v234_v36 }
 0x2b3   :  { %v340_v40 = vpop.f32.mrb[4].mxu0 }
 0x2b4   :  { %v341_v41 = vadd.f32 %v424_v39, %v340_v40  ;;  %v499_v42 = vpop.f32.mrb[5].mxu0 }
 0x2b5   :  { %v343_v43 = vpop.f32.mrb[6].mxu0 }
 0x2b6   :  { %v346_v44 = vmax.f32 %v341_v41, 0.0  ;;  %v500_v45 = vpop.f32.mrb[7].mxu0 }
 0x2b8   :  { %v347_v46 = vpack.c.bf16 %v346_v44, %v346_v44 }
 0x2ba   :  { %502 = vmatpush3.bf16.xpose.msra.mxu1 %v347_v46 }
 0x2c1   :  { %504 = vmatmul.mubr.bf16.vlgmr.msra.gmra.mrb[4].mxu1 %v348_v47 }
 0x394   :  { %v389_v49 = vpop.f32.mrb[4].mxu1 }
 0x395   :  { %v390_v50 = vadd.f32 %v389_v49, %v353_v48  ;;  %v505_v51 = vpop.f32.mrb[5].mxu1 }
 0x396   :  { %v392_v52 = vpop.f32.mrb[6].mxu1 }
 0x397   :  { %v506_v53 = vpop.f32.mrb[7].mxu1  ;;  %396 = vst.msk [vmem:[#allocation7] sm:$0xff] %vm395_vm3, %v390_v50 }
 0x398   :  { %587 = shalt.err (!%p584_p6)
}
 0x399   :  { %s588_s24 = scalar_lea.hbm %s754_s9, 128 }
 0x39a   :  { %p589_p7 = scmp.ne.s32.totalorder %s754_s9, %s588_s24  ;;  %p592_p8 = scmp.lt.u32.totalorder %s588_s24, %s754_s9 }
 0x39c   :  { %p594_p9 = pnand %p592_p8, %p589_p7 }
 0x39e   :  { %597 = shalt.err (!%p594_p9)
}
 0x39f   :  { %406 = dma.vmem_to_hbm [thread:$0]  %s404_s22, 128, %s754_s9, [#allocation4]  }
 0x3a0   :  { %602 = dma.done.wait [#allocation4], 128  }
 0x3a1   :  { %603 = vsyncadd [#allocation4], 4294967168 }
 0x3a2   :  { %410 = vsyncpa [#allocation3], 1 }
 0x3a3   :  { %411 = vsyncpa [#allocation6], 1 }
 0x3a4   :  { %412 = vsyncpa [#allocation4], 1 }

</bundles_post_ra>
